<compile_context>
chip_gen: v7x
topology: tpu7x:2x2x1
jax: 0.10.0
libtpu: 0.0.40
codegen_flags: <defaults>
</compile_context>

<pallas_src>
import functools

import jax
import jax.numpy as jnp
from jax.experimental import pallas as pl
from jax.experimental.pallas import tpu as pltpu

_LANE = 128  # lane width (last-dim tiling)


def _round_up(x: int, m: int) -> int:
    return ((x + m - 1) // m) * m


def _device_kind() -> str:
    try:
        return jax.devices()[0].device_kind.lower()
    except Exception:
        return ""


def _mxu_dim() -> int:
    """MXU systolic dim: 128 on <=v5*, 256 on v6e/v7x. Safe default: 128."""
    kind = _device_kind()
    for tag in ("v2", "v3", "v4", "v5"):
        if tag in kind:
            return 128
    if "v6" in kind or "v7" in kind:
        return 256
    return 128


def _is_v7x() -> bool:
    return "v7" in _device_kind()


def _pad_feature(d: int, mxu: int) -> int:
    """Pad to 128 lanes; dims >128 pad to the MXU width (256 on v6e/v7x)."""
    p = _round_up(d, _LANE)
    if mxu > _LANE and p > _LANE:
        p = _round_up(p, mxu)
    return p


def _choose_batch_tile(B: int, batch_tile: int, sub: int, min_steps: int):
    """Pick (tb, padded_B) minimizing dead rows, then grid steps."""
    b_up = _round_up(max(B, sub), sub)
    max_tb = min(_round_up(batch_tile, sub), b_up)
    best = None  # (bp, steps, tb)
    tb = sub
    while tb <= max_tb:
        bp = _round_up(b_up, tb)
        steps = bp // tb
        if steps >= min_steps:
            if best is None or (bp, steps) < best[:2]:
                best = (bp, steps, tb)
        tb += sub
    if best is None:  # batch too small to honor min_steps -> single step
        return max_tb, _round_up(b_up, max_tb)
    return best[2], best[0]


def _mlp_kernel(*refs, dims, num_layers, compute_dtype):
    """Fused MLP body.

    refs = (x_ref, w_0, b_0, ..., w_{n-1}, b_{n-1}, o_ref, h_scratch)
      x_ref:     [TB, dims[0]]  compute_dtype (padded input tile)
      w_i:       [dims[i], dims[i+1]]  compute_dtype (padded, grid-invariant)
      b_i:       [1, dims[i+1]]  f32
      o_ref:     [TB, dims[-1]]
      h_scratch: [TB, max hidden dim]  compute_dtype VMEM scratch
    """
    x_ref = refs[0]
    w_refs = [refs[1 + 2 * i] for i in range(num_layers)]
    b_refs = [refs[2 + 2 * i] for i in range(num_layers)]
    o_ref = refs[1 + 2 * num_layers]
    h_ref = refs[2 + 2 * num_layers]

    for i in range(num_layers):
        d_in, d_out = dims[i], dims[i + 1]
        # Layer 0 reads the input tile directly (no staging copy); later layers
        # read the previous activation from the compute-dtype VMEM scratch.
        a = x_ref[...] if i == 0 else h_ref[:, :d_in]
        # MXU matmul: compute-dtype operands, f32 accumulation.
        y = jnp.dot(a, w_refs[i][...], preferred_element_type=jnp.float32)
        y = y + b_refs[i][...]  # f32 bias epilogue (VPU)
        if i < num_layers - 1:
            # tanh on the EUP in compute dtype (bf16 on v6e/v7x); the activation
            # stays resident in VMEM scratch between layers (no HBM traffic).
            h_ref[:, :d_out] = jnp.tanh(y.astype(compute_dtype))
        else:
            o_ref[...] = y.astype(o_ref.dtype)


def mlp_forward(x, params, *, batch_tile=512, compute_dtype=jnp.bfloat16):
    """Fused MLP forward: one pallas_call for the whole network.

    params: list of (W [d_in, d_out], b [1, d_out]).
    compute_dtype: MXU operand dtype (default bf16; pass jnp.float32 for
      bit-accurate results at ~3-6x lower MXU throughput).
    """
    B, d0 = x.shape
    n = len(params)
    sizes = [d0] + [w.shape[1] for (w, _) in params]

    mxu = _mxu_dim()
    dims_p = [_pad_feature(d, mxu) for d in sizes]

    c_itemsize = jnp.dtype(compute_dtype).itemsize
    out_itemsize = jnp.dtype(x.dtype).itemsize
    sub = 8 if c_itemsize >= 4 else 16  # sublane granularity for the batch tile

    # On v7x (2 TensorCores) ensure >= 2 grid steps so the "parallel" batch axis
    # actually shards across both cores; tb is chosen to minimize dead rows.
    min_steps = 2 if (_is_v7x() and _round_up(B, sub) >= 2 * sub) else 1
    tb, bp = _choose_batch_tile(B, batch_tile, sub, min_steps)
    grid = (bp // tb,)

    # Zero-pad input and parameters. Padding is mathematically exact: padded
    # weight rows/cols and bias lanes are zero, tanh(0) == 0, so padded output
    # lanes stay zero and are sliced off. Padded batch rows are garbage but are
    # also sliced off.
    xp = jnp.zeros((bp, dims_p[0]), compute_dtype).at[:B, :d0].set(
        x.astype(compute_dtype))
    padded_wb = []
    for i, (w, b) in enumerate(params):
        wp = jnp.zeros((dims_p[i], dims_p[i + 1]), compute_dtype)
        wp = wp.at[: sizes[i], : sizes[i + 1]].set(w.astype(compute_dtype))
        bpad = jnp.zeros((1, dims_p[i + 1]), jnp.float32)
        bpad = bpad.at[:, : sizes[i + 1]].set(
            b.reshape(1, -1).astype(jnp.float32))
        padded_wb += [wp, bpad]

    hidden_dims = dims_p[1:-1]
    hidden_w = max(hidden_dims) if hidden_dims else _LANE
    scratch_shapes = [pltpu.VMEM((tb, hidden_w), compute_dtype)]

    # VMEM budget computed from actual buffer sizes (weights x buffer count,
    # double-buffered x/out tiles, activation scratch) + 50% headroom, capped by
    # physical VMEM (64 MiB/TC on v7x, 128 MiB on v5e/v6e).
    w_bytes = sum(dims_p[i] * dims_p[i + 1] * c_itemsize + dims_p[i + 1] * 4
                  for i in range(n))
    tile_bytes = tb * dims_p[0] * c_itemsize + tb * dims_p[-1] * out_itemsize
    scratch_bytes = tb * hidden_w * c_itemsize
    try:
        phys_vmem = int(pltpu.get_tpu_info().vmem_capacity_bytes)
    except Exception:
        phys_vmem = 64 * 1024 * 1024
    vmem_cap = max(int(phys_vmem * 0.8), 32 * 1024 * 1024)

    # Advisory cost for the XLA scheduler.
    flops = sum(2 * bp * dims_p[i] * dims_p[i + 1] for i in range(n))
    transcendentals = bp * sum(hidden_dims)
    bytes_accessed = (bp * dims_p[0] * c_itemsize + w_bytes
                      + bp * dims_p[-1] * out_itemsize)

    kernel = functools.partial(
        _mlp_kernel, dims=tuple(dims_p), num_layers=n,
        compute_dtype=compute_dtype)

    def _build(single_buffer_weights):
        # x / out tiled over the batch grid; weights & biases grid-invariant.
        in_specs = [pl.BlockSpec((tb, dims_p[0]), lambda i: (i, 0))]
        for li in range(n):
            w_shape = (dims_p[li], dims_p[li + 1])
            b_shape = (1, dims_p[li + 1])
            if single_buffer_weights:
                # Invariant blocks: single buffer (halves weight VMEM footprint).
                in_specs.append(pl.BlockSpec(
                    w_shape, lambda i: (0, 0), pipeline_mode=pl.Buffered(1)))
                in_specs.append(pl.BlockSpec(
                    b_shape, lambda i: (0, 0), pipeline_mode=pl.Buffered(1)))
            else:
                in_specs.append(pl.BlockSpec(w_shape, lambda i: (0, 0)))
                in_specs.append(pl.BlockSpec(b_shape, lambda i: (0, 0)))
        out_specs = pl.BlockSpec((tb, dims_p[-1]), lambda i: (i, 0))

        weight_bufs = 1 if single_buffer_weights else 2
        vmem_need = weight_bufs * w_bytes + 2 * tile_bytes + scratch_bytes
        vmem_limit = min(max(int(vmem_need * 1.5), 16 * 1024 * 1024), vmem_cap)

        return pl.pallas_call(
            kernel,
            out_shape=jax.ShapeDtypeStruct((bp, dims_p[-1]), x.dtype),
            grid=grid,
            in_specs=in_specs,
            out_specs=out_specs,
            scratch_shapes=scratch_shapes,
            compiler_params=pltpu.CompilerParams(
                dimension_semantics=("parallel",),  # batch axis: megacore-shardable
                vmem_limit_bytes=vmem_limit),
            cost_estimate=pl.CostEstimate(
                flops=flops,
                transcendentals=transcendentals,
                bytes_accessed=bytes_accessed),
        )

    try:
        out_p = _build(True)(xp, *padded_wb)
        jax.block_until_ready(out_p)
    except Exception:
        # pipeline_mode=pl.Buffered(1) unsupported in this jax version -> fall
        # back to default double buffering (2x weight VMEM, same semantics).
        out_p = _build(False)(xp, *padded_wb)

    return out_p[:B, : sizes[-1]]


def init_mlp_params(key, sizes, dtype=jnp.float32):
    """Synthetic init matching nn.Linear shapes (W stored transposed [in, out])."""
    params = []
    for i in range(len(sizes) - 1):
        d_in, d_out = sizes[i], sizes[i + 1]
        key, kw, kb = jax.random.split(key, 3)
        bound = 1.0 / (d_in ** 0.5)
        w = jax.random.uniform(kw, (d_in, d_out), dtype, -bound, bound)
        b = jax.random.uniform(kb, (1, d_out), dtype, -bound, bound)
        params.append((w, b))
    return params


def mlp_reference(x, params):
    """Pure-JAX reference: Linear -> Tanh -> ... -> Linear."""
    n = len(params)
    for i, (w, b) in enumerate(params):
        x = x @ w + b
        if i < n - 1:
            x = jnp.tanh(x)
    return x


if __name__ == "__main__":
    key = jax.random.PRNGKey(0)
    sizes = (32, 64, 16)  # MLP(sizes): Linear(32,64) -> Tanh -> Linear(64,16)
    batch = 8

    k_x, k_p = jax.random.split(key)
    x = jax.random.normal(k_x, (batch, sizes[0]), jnp.float32)
    params = init_mlp_params(k_p, sizes)
    ref = mlp_reference(x, params)

    # Default fast path: bf16 MXU operands, f32 accumulate/epilogue.
    out_bf16 = jax.block_until_ready(mlp_forward(x, params))
    assert out_bf16.shape == (batch, sizes[-1])
    assert jnp.allclose(out_bf16, ref, atol=5e-2, rtol=5e-2), "bf16 path mismatch"

    # f32 MXU path: bit-accuracy check against the pure-JAX reference.
    out_f32 = jax.block_until_ready(
        mlp_forward(x, params, compute_dtype=jnp.float32))
    assert out_f32.shape == (batch, sizes[-1])
    assert jnp.allclose(out_f32, ref, atol=1e-5, rtol=1e-5), "f32 path mismatch"

    print("KERNEL_OK")
</pallas_src>

<mosaic_0001>
module attributes {stable_mosaic.version = 11 : i64} {
  func.func @_mlp_kernel(%arg0: i32, %arg1: memref<16x128xbf16, #tpu.memory_space<vmem>>, %arg2: memref<128x128xbf16, #tpu.memory_space<vmem>>, %arg3: memref<1x128xf32, #tpu.memory_space<vmem>>, %arg4: memref<128x128xbf16, #tpu.memory_space<vmem>>, %arg5: memref<1x128xf32, #tpu.memory_space<vmem>>, %arg6: memref<16x128xf32, #tpu.memory_space<vmem>>, %arg7: memref<16x128xbf16, #tpu.memory_space<vmem>>) attributes {dimension_semantics = [#tpu.dimension_semantics<parallel>], iteration_bounds = array<i64: 1>, scalar_prefetch = 0 : i64, scratch_operands = 1 : i64, tpu.core_type = #tpu.core_type<tc>, window_params = [{transform_indices = @transform_0, window_bounds = array<i64: 16, 128>}, {pipeline_mode = #tpu.pipeline_mode<synchronous>, transform_indices = @transform_1, window_bounds = array<i64: 128, 128>}, {pipeline_mode = #tpu.pipeline_mode<synchronous>, transform_indices = @transform_2, window_bounds = array<i64: 1, 128>}, {pipeline_mode = #tpu.pipeline_mode<synchronous>, transform_indices = @transform_3, window_bounds = array<i64: 128, 128>}, {pipeline_mode = #tpu.pipeline_mode<synchronous>, transform_indices = @transform_4, window_bounds = array<i64: 1, 128>}, {transform_indices = @transform_5, window_bounds = array<i64: 16, 128>}]} {
    %c0 = arith.constant 0 : index
    %c0_0 = arith.constant 0 : index
    %0 = vector.load %arg1[%c0, %c0_0] : memref<16x128xbf16, #tpu.memory_space<vmem>>, vector<16x128xbf16>
    %c0_1 = arith.constant 0 : index
    %c0_2 = arith.constant 0 : index
    %1 = vector.load %arg2[%c0_1, %c0_2] : memref<128x128xbf16, #tpu.memory_space<vmem>>, vector<128x128xbf16>
    %cst = arith.constant dense<0.000000e+00> : vector<16x128xf32>
    %2 = tpu.matmul %0, %1, %cst {dimension_numbers = #tpu.dot_dimension_numbers<[1], [0], [0], [1], [0, 0, 1, 1], [], []>} : vector<16x128xbf16>, vector<128x128xbf16>, vector<16x128xf32> -> vector<16x128xf32>
    %c0_3 = arith.constant 0 : index
    %c0_4 = arith.constant 0 : index
    %3 = vector.load %arg3[%c0_3, %c0_4] : memref<1x128xf32, #tpu.memory_space<vmem>>, vector<1x128xf32>
    %4 = vector.broadcast %3 : vector<1x128xf32> to vector<16x128xf32>
    %5 = arith.addf %2, %4 : vector<16x128xf32>
    %6 = arith.truncf %5 : vector<16x128xf32> to vector<16x128xbf16>
    %7 = math.tanh %6 : vector<16x128xbf16>
    %c0_5 = arith.constant 0 : index
    %c0_6 = arith.constant 0 : index
    %8 = vector.load %arg7[%c0_5, %c0_6] : memref<16x128xbf16, #tpu.memory_space<vmem>>, vector<16x128xbf16>
    tpu.vector_store %arg7[%c0_5, %c0_6], %7 {strides = array<i32>} : memref<16x128xbf16, #tpu.memory_space<vmem>>, vector<16x128xbf16>,
    %c0_7 = arith.constant 0 : index
    %c0_8 = arith.constant 0 : index
    %9 = vector.load %arg7[%c0_7, %c0_8] : memref<16x128xbf16, #tpu.memory_space<vmem>>, vector<16x128xbf16>
    %c0_9 = arith.constant 0 : index
    %c0_10 = arith.constant 0 : index
    %10 = vector.load %arg4[%c0_9, %c0_10] : memref<128x128xbf16, #tpu.memory_space<vmem>>, vector<128x128xbf16>
    %cst_11 = arith.constant dense<0.000000e+00> : vector<16x128xf32>
    %11 = tpu.matmul %9, %10, %cst_11 {dimension_numbers = #tpu.dot_dimension_numbers<[1], [0], [0], [1], [0, 0, 1, 1], [], []>} : vector<16x128xbf16>, vector<128x128xbf16>, vector<16x128xf32> -> vector<16x128xf32>
    %c0_12 = arith.constant 0 : index
    %c0_13 = arith.constant 0 : index
    %12 = vector.load %arg5[%c0_12, %c0_13] : memref<1x128xf32, #tpu.memory_space<vmem>>, vector<1x128xf32>
    %13 = vector.broadcast %12 : vector<1x128xf32> to vector<16x128xf32>
    %14 = arith.addf %11, %13 : vector<16x128xf32>
    %c0_14 = arith.constant 0 : index
    %c0_15 = arith.constant 0 : index
    %15 = vector.load %arg6[%c0_14, %c0_15] : memref<16x128xf32, #tpu.memory_space<vmem>>, vector<16x128xf32>
    tpu.vector_store %arg6[%c0_14, %c0_15], %14 {strides = array<i32>} : memref<16x128xf32, #tpu.memory_space<vmem>>, vector<16x128xf32>,
    return
  }
  func.func @transform_0(%arg0: i32) -> (i32, i32) {
    %c0_i32 = arith.constant 0 : i32
    %c0_i32_0 = arith.constant 0 : i32
    return %arg0, %c0_i32 : i32, i32
  }
  func.func @transform_1(%arg0: i32) -> (i32, i32) {
    %c0_i32 = arith.constant 0 : i32
    %c0_i32_0 = arith.constant 0 : i32
    %c0_i32_1 = arith.constant 0 : i32
    return %c0_i32, %c0_i32_0 : i32, i32
  }
  func.func @transform_2(%arg0: i32) -> (i32, i32) {
    %c0_i32 = arith.constant 0 : i32
    %c0_i32_0 = arith.constant 0 : i32
    %c0_i32_1 = arith.constant 0 : i32
    return %c0_i32, %c0_i32_0 : i32, i32
  }
  func.func @transform_3(%arg0: i32) -> (i32, i32) {
    %c0_i32 = arith.constant 0 : i32
    %c0_i32_0 = arith.constant 0 : i32
    %c0_i32_1 = arith.constant 0 : i32
    return %c0_i32, %c0_i32_0 : i32, i32
  }
  func.func @transform_4(%arg0: i32) -> (i32, i32) {
    %c0_i32 = arith.constant 0 : i32
    %c0_i32_0 = arith.constant 0 : i32
    %c0_i32_1 = arith.constant 0 : i32
    return %c0_i32, %c0_i32_0 : i32, i32
  }
  func.func @transform_5(%arg0: i32) -> (i32, i32) {
    %c0_i32 = arith.constant 0 : i32
    %c0_i32_0 = arith.constant 0 : i32
    return %arg0, %c0_i32 : i32, i32
  }
}

module attributes {stable_mosaic.version = 11 : i64} {
  func.func @_mlp_kernel(%arg0: i32, %arg1: memref<16x128xbf16, #tpu.memory_space<vmem>>, %arg2: memref<128x128xbf16, #tpu.memory_space<vmem>>, %arg3: memref<1x128xf32, #tpu.memory_space<vmem>>, %arg4: memref<128x128xbf16, #tpu.memory_space<vmem>>, %arg5: memref<1x128xf32, #tpu.memory_space<vmem>>, %arg6: memref<16x128xf32, #tpu.memory_space<vmem>>, %arg7: memref<16x128xbf16, #tpu.memory_space<vmem>>) attributes {dimension_semantics = [#tpu.dimension_semantics<parallel>], iteration_bounds = array<i64: 1>, scalar_prefetch = 0 : i64, scratch_operands = 1 : i64, tpu.core_type = #tpu.core_type<tc>, window_params = [{transform_indices = @transform_0, window_bounds = array<i64: 16, 128>}, {pipeline_mode = #tpu.pipeline_mode<synchronous>, transform_indices = @transform_1, window_bounds = array<i64: 128, 128>}, {pipeline_mode = #tpu.pipeline_mode<synchronous>, transform_indices = @transform_2, window_bounds = array<i64: 1, 128>}, {pipeline_mode = #tpu.pipeline_mode<synchronous>, transform_indices = @transform_3, window_bounds = array<i64: 128, 128>}, {pipeline_mode = #tpu.pipeline_mode<synchronous>, transform_indices = @transform_4, window_bounds = array<i64: 1, 128>}, {transform_indices = @transform_5, window_bounds = array<i64: 16, 128>}]} {
    %c0 = arith.constant 0 : index
    %c0_0 = arith.constant 0 : index
    %0 = vector.load %arg1[%c0, %c0_0] : memref<16x128xbf16, #tpu.memory_space<vmem>>, vector<16x128xbf16>
    %c0_1 = arith.constant 0 : index
    %c0_2 = arith.constant 0 : index
    %1 = vector.load %arg2[%c0_1, %c0_2] : memref<128x128xbf16, #tpu.memory_space<vmem>>, vector<128x128xbf16>
    %cst = arith.constant dense<0.000000e+00> : vector<16x128xf32>
    %2 = tpu.matmul %0, %1, %cst {dimension_numbers = #tpu.dot_dimension_numbers<[1], [0], [0], [1], [0, 0, 1, 1], [], []>} : vector<16x128xbf16>, vector<128x128xbf16>, vector<16x128xf32> -> vector<16x128xf32>
    %c0_3 = arith.constant 0 : index
    %c0_4 = arith.constant 0 : index
    %3 = vector.load %arg3[%c0_3, %c0_4] : memref<1x128xf32, #tpu.memory_space<vmem>>, vector<1x128xf32>
    %4 = vector.broadcast %3 : vector<1x128xf32> to vector<16x128xf32>
    %5 = arith.addf %2, %4 : vector<16x128xf32>
    %6 = arith.truncf %5 : vector<16x128xf32> to vector<16x128xbf16>
    %7 = math.tanh %6 : vector<16x128xbf16>
    %c0_5 = arith.constant 0 : index
    %c0_6 = arith.constant 0 : index
    %8 = vector.load %arg7[%c0_5, %c0_6] : memref<16x128xbf16, #tpu.memory_space<vmem>>, vector<16x128xbf16>
    tpu.vector_store %arg7[%c0_5, %c0_6], %7 {strides = array<i32>} : memref<16x128xbf16, #tpu.memory_space<vmem>>, vector<16x128xbf16>,
    %c0_7 = arith.constant 0 : index
    %c0_8 = arith.constant 0 : index
    %9 = vector.load %arg7[%c0_7, %c0_8] : memref<16x128xbf16, #tpu.memory_space<vmem>>, vector<16x128xbf16>
    %c0_9 = arith.constant 0 : index
    %c0_10 = arith.constant 0 : index
    %10 = vector.load %arg4[%c0_9, %c0_10] : memref<128x128xbf16, #tpu.memory_space<vmem>>, vector<128x128xbf16>
    %cst_11 = arith.constant dense<0.000000e+00> : vector<16x128xf32>
    %11 = tpu.matmul %9, %10, %cst_11 {dimension_numbers = #tpu.dot_dimension_numbers<[1], [0], [0], [1], [0, 0, 1, 1], [], []>} : vector<16x128xbf16>, vector<128x128xbf16>, vector<16x128xf32> -> vector<16x128xf32>
    %c0_12 = arith.constant 0 : index
    %c0_13 = arith.constant 0 : index
    %12 = vector.load %arg5[%c0_12, %c0_13] : memref<1x128xf32, #tpu.memory_space<vmem>>, vector<1x128xf32>
    %13 = vector.broadcast %12 : vector<1x128xf32> to vector<16x128xf32>
    %14 = arith.addf %11, %13 : vector<16x128xf32>
    %c0_14 = arith.constant 0 : index
    %c0_15 = arith.constant 0 : index
    %15 = vector.load %arg6[%c0_14, %c0_15] : memref<16x128xf32, #tpu.memory_space<vmem>>, vector<16x128xf32>
    tpu.vector_store %arg6[%c0_14, %c0_15], %14 {strides = array<i32>} : memref<16x128xf32, #tpu.memory_space<vmem>>, vector<16x128xf32>,
    return
  }
  func.func @transform_0(%arg0: i32) -> (i32, i32) {
    %c0_i32 = arith.constant 0 : i32
    %c0_i32_0 = arith.constant 0 : i32
    return %arg0, %c0_i32 : i32, i32
  }
  func.func @transform_1(%arg0: i32) -> (i32, i32) {
    %c0_i32 = arith.constant 0 : i32
    %c0_i32_0 = arith.constant 0 : i32
    %c0_i32_1 = arith.constant 0 : i32
    return %c0_i32, %c0_i32_0 : i32, i32
  }
  func.func @transform_2(%arg0: i32) -> (i32, i32) {
    %c0_i32 = arith.constant 0 : i32
    %c0_i32_0 = arith.constant 0 : i32
    %c0_i32_1 = arith.constant 0 : i32
    return %c0_i32, %c0_i32_0 : i32, i32
  }
  func.func @transform_3(%arg0: i32) -> (i32, i32) {
    %c0_i32 = arith.constant 0 : i32
    %c0_i32_0 = arith.constant 0 : i32
    %c0_i32_1 = arith.constant 0 : i32
    return %c0_i32, %c0_i32_0 : i32, i32
  }
  func.func @transform_4(%arg0: i32) -> (i32, i32) {
    %c0_i32 = arith.constant 0 : i32
    %c0_i32_0 = arith.constant 0 : i32
    %c0_i32_1 = arith.constant 0 : i32
    return %c0_i32, %c0_i32_0 : i32, i32
  }
  func.func @transform_5(%arg0: i32) -> (i32, i32) {
    %c0_i32 = arith.constant 0 : i32
    %c0_i32_0 = arith.constant 0 : i32
    return %arg0, %c0_i32 : i32, i32
  }
}

</mosaic_0001>

<bundles_post_ra>
// kernel: tpu_custom_call.1
= control target key start
LH: loop header
LB: loop body
LE: loop exit
PB: predicated region body
PF: predicated region fallthrough
CT: control target
= control target key end

     0   :  { %10 = vsyncpa [#allocation4], 0  ;;  %s629_s0 = inlined_call_operand.hbm [shape: bf16[16,128], index: 0, kind: input, shape index: {}]   ;;  %s630_s1 = inlined_call_operand.hbm [shape: bf16[128,128], index: 1, kind: input, shape index: {}]   ;;  %s631_s2 = inlined_call_operand.vmem [shape: f32[1,128], index: 2, kind: input, shape index: {}]   ;;  %s632_s3 = inlined_call_operand.hbm [shape: bf16[128,128], index: 3, kind: input, shape index: {}]   ;;  %s633_s4 = inlined_call_operand.vmem [shape: f32[1,128], index: 4, kind: input, shape index: {}]   ;;  %s634_s5 = inlined_call_operand.hbm [shape: f32[16,128], index: 5, kind: output, shape index: {}]  }
   0x1   :  { %11 = vsyncpa [#allocation7], 0 }
   0x2   :  { %12 = vsyncpa [#allocation5], 0  ;;  %s519_s18 = smov [#allocation6]   ;;  %s520_s20 = smov [#allocation3]  }
   0x3   :  { %s30_s19 = sshll.u32 %s519_s18, 4  ;;  %s18_s21 = sshll.u32 %s520_s20, 4  ;;  %s31_s19 = int_to_ptr.vmem [resolvable:$true] %s30_s19  ;;  %s559_s21 = int_to_ptr.vmem [resolvable:$true] %s18_s21 }
   0x4   :  { %s425_s24 = scalar_lea.hbm %s630_s1, 1024 }
   0x5   :  { %p426_p0 = scmp.ne.s32.totalorder %s630_s1, %s425_s24  ;;  %p429_p1 = scmp.lt.u32.totalorder %s425_s24, %s630_s1 }
   0x7   :  { %p431_p2 = pnand %p429_p1, %p426_p0 }
   0x9   :  { %434 = shalt.err (!%p431_p2)
}
   0xa   :  { %s435_s29 = scalar_lea.vmem %s31_s19, 1024  ;;  %p440_p4 = scmp.lt.s32.totalorder %s31_s19, %s31_s19 }
   0xb   :  { %p436_p3 = scmp.ne.s32.totalorder %s31_s19, %s435_s29  ;;  %p441_p5 = scmp.lt.s32.totalorder %s435_s29, %s435_s29 }
   0xd   :  { %p442_p6 = por %p441_p5, %p440_p4 }
   0xf   :  { %p443_p7 = pnand %p442_p6, %p436_p3 }
  0x11   :  { %446 = shalt.err (!%p443_p7)
}
  0x12   :  { %s521_s30 = smov 64   ;;  %s522_s6 = smov 4  }
  0x13   :  { %36 = dma.hbm_to_vmem [thread:$0]  %s630_s1, 1024, %s31_s19, [#allocation7], %s521_s30, %s521_s30, %s522_s6  }
  0x14   :  { %s447_s11 = scalar_lea.hbm %s629_s0, 128 }
  0x15   :  { %p448_p8 = scmp.ne.s32.totalorder %s629_s0, %s447_s11  ;;  %p451_p9 = scmp.lt.u32.totalorder %s447_s11, %s629_s0 }
  0x17   :  { %p453_p10 = pnand %p451_p9, %p448_p8 }
  0x19   :  { %456 = shalt.err (!%p453_p10)
}
  0x1a   :  { %s457_s16 = scalar_lea.vmem %s559_s21, 128  ;;  %p462_p12 = scmp.lt.s32.totalorder %s559_s21, %s559_s21 }
  0x1b   :  { %p458_p11 = scmp.ne.s32.totalorder %s559_s21, %s457_s16  ;;  %p463_p13 = scmp.lt.s32.totalorder %s457_s16, %s457_s16 }
  0x1d   :  { %p464_p0 = por %p463_p13, %p462_p12 }
  0x1f   :  { %p465_p1 = pnand %p464_p0, %p458_p11 }
  0x21   :  { %468 = shalt.err (!%p465_p1)
}
  0x22   :  { %24 = dma.hbm_to_vmem [thread:$0]  %s629_s0, 128, %s559_s21, [#allocation4], %s521_s30, %s521_s30, %s522_s6  }
  0x23   :  { %s523_s18 = smov [#allocation8]   ;;  %s469_s23 = scalar_lea.hbm %s632_s3, 1024 }
  0x24   :  { %s44_s19 = sshll.u32 %s523_s18, 4  ;;  %p470_p2 = scmp.ne.s32.totalorder %s632_s3, %s469_s23  ;;  %s45_s19 = int_to_ptr.vmem [resolvable:$true] %s44_s19 }
  0x25   :  { %p473_p3 = scmp.lt.u32.totalorder %s469_s23, %s632_s3 }
  0x27   :  { %p475_p4 = pnand %p473_p3, %p470_p2 }
  0x29   :  { %478 = shalt.err (!%p475_p4)
}
  0x2a   :  { %s479_s28 = scalar_lea.vmem %s45_s19, 1024  ;;  %p484_p6 = scmp.lt.s32.totalorder %s45_s19, %s45_s19 }
  0x2b   :  { %p480_p5 = scmp.ne.s32.totalorder %s45_s19, %s479_s28  ;;  %p485_p7 = scmp.lt.s32.totalorder %s479_s28, %s479_s28 }
  0x2d   :  { %p486_p8 = por %p485_p7, %p484_p6 }
  0x2f   :  { %p487_p9 = pnand %p486_p8, %p480_p5 }
  0x31   :  { %490 = shalt.err (!%p487_p9)
}
  0x32   :  { %50 = dma.hbm_to_vmem [thread:$0]  %s632_s3, 1024, %s45_s19, [#allocation7], %s521_s30, %s521_s30, %s522_s6  }
  0x33   :  { %513 = dma.done.wait [#allocation4], 128  }
  0x34   :  { %514 = vsyncadd [#allocation4], 4294967168 }
  0x35   :  { %515 = dma.done.wait [#allocation7], 2048  }
  0x36   :  { %516 = vsyncadd [#allocation7], 4294965248  ;;  %v524_v0 = vmov 0.0   ;;  %vm525_vm0 = vmmov 0   ;;  %v406_v1 = vld [vmem:[#allocation6] sm:$0xff]   ;;  %v407_v2 = vld [vmem:[#allocation6 + $0x8] sm:$0xff]  }
  0x37   :  { %356 = vmatprep.subr.bf16.mxu0 %v524_v0  ;;  %372 = vmatprep.mubr.msk.bf16.mxu0 %vm525_vm0, %v524_v0  ;;  %v408_v3 = vld [vmem:[#allocation6 + $0x10] sm:$0xff]   ;;  %v415_v4 = vld [vmem:[#allocation8] sm:$0xff]   ;;  %v409_v5 = vld [vmem:[#allocation6 + $0x18] sm:$0xff]   ;;  %s526_s7 = smov [#allocation9]  }
  0x38   :  { %376 = vmatprep.subr.bf16.mxu1 %v524_v0  ;;  %392 = vmatprep.mubr.msk.bf16.mxu1 %vm525_vm0, %v524_v0  ;;  %v416_v6 = vld [vmem:[#allocation8 + $0x8] sm:$0xff]   ;;  %v410_v7 = vld [vmem:[#allocation6 + $0x20] sm:$0xff]   ;;  %v417_v8 = vld [vmem:[#allocation8 + $0x10] sm:$0xff]   ;;  %s306_s8 = sshll.u32 %s526_s7, 4  ;;  %s307_s8 = int_to_ptr.vmem [resolvable:$true] %s306_s8 }
  0x39   :  { %357 = vmatpush3.bf16.msra.mxu0 %v406_v1  ;;  %377 = vmatpush3.bf16.msra.mxu1 %v415_v4  ;;  %v411_v9 = vld [vmem:[#allocation6 + $0x28] sm:$0xff]   ;;  %v412_v10 = vld [vmem:[#allocation6 + $0x30] sm:$0xff]   ;;  %v413_v11 = vld [vmem:[#allocation6 + $0x38] sm:$0xff]   ;;  %p496_p11 = scmp.lt.s32.totalorder %s307_s8, %s307_s8 }
  0x3a   :  { %358 = vmatprep.subr.bf16.mxu0 %v524_v0  ;;  %378 = vmatprep.subr.bf16.mxu1 %v524_v0  ;;  %v414_v12 = vld [vmem:[#allocation3] sm:$0xff]   ;;  %v419_v14 = vld [vmem:[#allocation8 + $0x20] sm:$0xff]   ;;  %v420_v15 = vld [vmem:[#allocation8 + $0x28] sm:$0xff]  }
  0x3b   :  { %v418_v13 = vld [vmem:[#allocation8 + $0x18] sm:$0xff]   ;;  %v421_v16 = vld [vmem:[#allocation8 + $0x30] sm:$0xff]  }
  0x3c   :  { %v422_v17 = vld [vmem:[#allocation8 + $0x38] sm:$0xff]  }
  0x3d   :  { %359 = vmatpush3.bf16.msra.mxu0 %v407_v2  ;;  %379 = vmatpush3.bf16.msra.mxu1 %v416_v6  ;;  %v319_v18 = vld [vmem:[%s631_s2] ss:$0 sm:$0xff]  ;;  %s491_s2 = scalar_lea.vmem %s307_s8, 256 }
  0x3e   :  { %360 = vmatprep.subr.bf16.mxu0 %v524_v0  ;;  %380 = vmatprep.subr.bf16.mxu1 %v524_v0  ;;  %v329_v27 = vld [vmem:[%s633_s4] ss:$0 sm:$0xff]  ;;  %p492_p10 = scmp.ne.s32.totalorder %s307_s8, %s491_s2  ;;  %p497_p12 = scmp.lt.s32.totalorder %s491_s2, %s491_s2 }
  0x40   :  { %p498_p13 = por %p497_p12, %p496_p11 }
  0x41   :  { %361 = vmatpush3.bf16.msra.mxu0 %v408_v3  ;;  %381 = vmatpush3.bf16.msra.mxu1 %v417_v8 }
  0x42   :  { %362 = vmatprep.subr.bf16.mxu0 %v524_v0  ;;  %382 = vmatprep.subr.bf16.mxu1 %v524_v0  ;;  %p499_p0 = pnand %p498_p13, %p492_p10 }
  0x45   :  { %363 = vmatpush3.bf16.msra.mxu0 %v409_v5  ;;  %383 = vmatpush3.bf16.msra.mxu1 %v418_v13 }
  0x46   :  { %364 = vmatprep.subr.bf16.mxu0 %v524_v0  ;;  %384 = vmatprep.subr.bf16.mxu1 %v524_v0 }
  0x49   :  { %365 = vmatpush3.bf16.msra.mxu0 %v410_v7  ;;  %385 = vmatpush3.bf16.msra.mxu1 %v419_v14 }
  0x4a   :  { %366 = vmatprep.subr.bf16.mxu0 %v524_v0  ;;  %386 = vmatprep.subr.bf16.mxu1 %v524_v0 }
  0x4d   :  { %367 = vmatpush3.bf16.msra.mxu0 %v411_v9  ;;  %387 = vmatpush3.bf16.msra.mxu1 %v420_v15 }
  0x4e   :  { %368 = vmatprep.subr.bf16.mxu0 %v524_v0  ;;  %388 = vmatprep.subr.bf16.mxu1 %v524_v0 }
  0x51   :  { %369 = vmatpush3.bf16.msra.mxu0 %v412_v10  ;;  %389 = vmatpush3.bf16.msra.mxu1 %v421_v16 }
  0x52   :  { %370 = vmatprep.subr.bf16.mxu0 %v524_v0  ;;  %390 = vmatprep.subr.bf16.mxu1 %v524_v0 }
  0x55   :  { %371 = vmatpush3.bf16.msra.mxu0 %v413_v11  ;;  %391 = vmatpush3.bf16.msra.mxu1 %v422_v17 }
  0x58   :  { %373 = vmatmul.mubr.bf16.vlgmr.msra.gmra.mrb[0].mxu0 %v414_v12 }
 0x12b   :  { %v176_v19 = vpop.f32.mrb[0].mxu0 }
 0x12c   :  { %v374_v20 = vpop.f32.mrb[1].mxu0  ;;  %v177_v22 = vadd.f32 %v319_v18, %v176_v19 }
 0x12d   :  { %v179_v21 = vpop.f32.mrb[2].mxu0 }
 0x12e   :  { %v180_v23 = vadd.f32 %v319_v18, %v179_v21  ;;  %v375_v24 = vpop.f32.mrb[3].mxu0 }
 0x130   :  { %v183_v25 = vpack.c.bf16 %v180_v23, %v177_v22 }
 0x132   :  { %423 = vtanh.bf16 %v183_v25 }
 0x13d   :  { %v424_v26 = vpop.eup %423 }
 0x13e   :  { %393 = vmatmul.mubr.bf16.vlgmr.msra.gmra.mrb[0].mxu1 %v424_v26 }
 0x211   :  { %v292_v28 = vpop.f32.mrb[0].mxu1 }
 0x212   :  { %v293_v29 = vadd.f32 %v329_v27, %v292_v28  ;;  %v394_v30 = vpop.f32.mrb[1].mxu1 }
 0x213   :  { %v295_v31 = vpop.f32.mrb[2].mxu1 }
 0x214   :  { %299 = vst [vmem:[#allocation9] sm:$0xff] %v293_v29  ;;  %v296_v32 = vadd.f32 %v329_v27, %v295_v31  ;;  %v395_v33 = vpop.f32.mrb[3].mxu1 }
 0x216   :  { %300 = vst [vmem:[#allocation9 + $0x8] sm:$0xff] %v296_v32 }
 0x217   :  { %502 = shalt.err (!%p499_p0)
}
 0x218   :  { %s503_s10 = scalar_lea.hbm %s634_s5, 256 }
 0x219   :  { %p504_p1 = scmp.ne.s32.totalorder %s634_s5, %s503_s10  ;;  %p507_p2 = scmp.lt.u32.totalorder %s503_s10, %s634_s5 }
 0x21b   :  { %p509_p3 = pnand %p507_p2, %p504_p1 }
 0x21d   :  { %512 = shalt.err (!%p509_p3)
}
 0x21e   :  { %s527_s15 = smov 128   ;;  %s528_s16 = smov 8  }
 0x21f   :  { %312 = dma.vmem_to_hbm [thread:$0]  %s307_s8, 256, %s634_s5, [#allocation5], %s527_s15, %s527_s15, %s528_s16  }
 0x220   :  { %517 = dma.done.wait [#allocation5], 256  }
 0x221   :  { %518 = vsyncadd [#allocation5], 4294967040 }
 0x222   :  { %316 = vsyncpa [#allocation4], 1 }
 0x223   :  { %317 = vsyncpa [#allocation7], 1 }
 0x224   :  { %318 = vsyncpa [#allocation5], 1 }

// kernel: tpu_custom_call.1
= control target key start
LH: loop header
LB: loop body
LE: loop exit
PB: predicated region body
PF: predicated region fallthrough
CT: control target
= control target key end

     0   :  { %10 = vsyncpa [#allocation4], 0  ;;  %s629_s0 = inlined_call_operand.hbm [shape: bf16[16,128], index: 0, kind: input, shape index: {}]   ;;  %s630_s1 = inlined_call_operand.hbm [shape: bf16[128,128], index: 1, kind: input, shape index: {}]   ;;  %s631_s2 = inlined_call_operand.vmem [shape: f32[1,128], index: 2, kind: input, shape index: {}]   ;;  %s632_s3 = inlined_call_operand.hbm [shape: bf16[128,128], index: 3, kind: input, shape index: {}]   ;;  %s633_s4 = inlined_call_operand.vmem [shape: f32[1,128], index: 4, kind: input, shape index: {}]   ;;  %s634_s5 = inlined_call_operand.hbm [shape: f32[16,128], index: 5, kind: output, shape index: {}]  }
   0x1   :  { %11 = vsyncpa [#allocation7], 0 }
   0x2   :  { %12 = vsyncpa [#allocation5], 0  ;;  %s519_s18 = smov [#allocation6]   ;;  %s520_s20 = smov [#allocation3]  }
   0x3   :  { %s30_s19 = sshll.u32 %s519_s18, 4  ;;  %s18_s21 = sshll.u32 %s520_s20, 4  ;;  %s31_s19 = int_to_ptr.vmem [resolvable:$true] %s30_s19  ;;  %s559_s21 = int_to_ptr.vmem [resolvable:$true] %s18_s21 }
   0x4   :  { %s425_s24 = scalar_lea.hbm %s630_s1, 1024 }
   0x5   :  { %p426_p0 = scmp.ne.s32.totalorder %s630_s1, %s425_s24  ;;  %p429_p1 = scmp.lt.u32.totalorder %s425_s24, %s630_s1 }
   0x7   :  { %p431_p2 = pnand %p429_p1, %p426_p0 }
   0x9   :  { %434 = shalt.err (!%p431_p2)
}
   0xa   :  { %s435_s29 = scalar_lea.vmem %s31_s19, 1024  ;;  %p440_p4 = scmp.lt.s32.totalorder %s31_s19, %s31_s19 }
   0xb   :  { %p436_p3 = scmp.ne.s32.totalorder %s31_s19, %s435_s29  ;;  %p441_p5 = scmp.lt.s32.totalorder %s435_s29, %s435_s29 }
   0xd   :  { %p442_p6 = por %p441_p5, %p440_p4 }
   0xf   :  { %p443_p7 = pnand %p442_p6, %p436_p3 }
  0x11   :  { %446 = shalt.err (!%p443_p7)
}
  0x12   :  { %s521_s30 = smov 64   ;;  %s522_s6 = smov 4  }
  0x13   :  { %36 = dma.hbm_to_vmem [thread:$0]  %s630_s1, 1024, %s31_s19, [#allocation7], %s521_s30, %s521_s30, %s522_s6  }
  0x14   :  { %s447_s11 = scalar_lea.hbm %s629_s0, 128 }
  0x15   :  { %p448_p8 = scmp.ne.s32.totalorder %s629_s0, %s447_s11  ;;  %p451_p9 = scmp.lt.u32.totalorder %s447_s11, %s629_s0 }
  0x17   :  { %p453_p10 = pnand %p451_p9, %p448_p8 }
  0x19   :  { %456 = shalt.err (!%p453_p10)
}
  0x1a   :  { %s457_s16 = scalar_lea.vmem %s559_s21, 128  ;;  %p462_p12 = scmp.lt.s32.totalorder %s559_s21, %s559_s21 }
  0x1b   :  { %p458_p11 = scmp.ne.s32.totalorder %s559_s21, %s457_s16  ;;  %p463_p13 = scmp.lt.s32.totalorder %s457_s16, %s457_s16 }
  0x1d   :  { %p464_p0 = por %p463_p13, %p462_p12 }
  0x1f   :  { %p465_p1 = pnand %p464_p0, %p458_p11 }
  0x21   :  { %468 = shalt.err (!%p465_p1)
}
  0x22   :  { %24 = dma.hbm_to_vmem [thread:$0]  %s629_s0, 128, %s559_s21, [#allocation4], %s521_s30, %s521_s30, %s522_s6  }
  0x23   :  { %s523_s18 = smov [#allocation8]   ;;  %s469_s23 = scalar_lea.hbm %s632_s3, 1024 }
  0x24   :  { %s44_s19 = sshll.u32 %s523_s18, 4  ;;  %p470_p2 = scmp.ne.s32.totalorder %s632_s3, %s469_s23  ;;  %s45_s19 = int_to_ptr.vmem [resolvable:$true] %s44_s19 }
  0x25   :  { %p473_p3 = scmp.lt.u32.totalorder %s469_s23, %s632_s3 }
  0x27   :  { %p475_p4 = pnand %p473_p3, %p470_p2 }
  0x29   :  { %478 = shalt.err (!%p475_p4)
}
  0x2a   :  { %s479_s28 = scalar_lea.vmem %s45_s19, 1024  ;;  %p484_p6 = scmp.lt.s32.totalorder %s45_s19, %s45_s19 }
  0x2b   :  { %p480_p5 = scmp.ne.s32.totalorder %s45_s19, %s479_s28  ;;  %p485_p7 = scmp.lt.s32.totalorder %s479_s28, %s479_s28 }
  0x2d   :  { %p486_p8 = por %p485_p7, %p484_p6 }
  0x2f   :  { %p487_p9 = pnand %p486_p8, %p480_p5 }
  0x31   :  { %490 = shalt.err (!%p487_p9)
}
  0x32   :  { %50 = dma.hbm_to_vmem [thread:$0]  %s632_s3, 1024, %s45_s19, [#allocation7], %s521_s30, %s521_s30, %s522_s6  }
  0x33   :  { %513 = dma.done.wait [#allocation4], 128  }
  0x34   :  { %514 = vsyncadd [#allocation4], 4294967168 }
  0x35   :  { %515 = dma.done.wait [#allocation7], 2048  }
  0x36   :  { %516 = vsyncadd [#allocation7], 4294965248  ;;  %v524_v0 = vmov 0.0   ;;  %vm525_vm0 = vmmov 0   ;;  %v406_v1 = vld [vmem:[#allocation6] sm:$0xff]   ;;  %v407_v2 = vld [vmem:[#allocation6 + $0x8] sm:$0xff]  }
  0x37   :  { %356 = vmatprep.subr.bf16.mxu0 %v524_v0  ;;  %372 = vmatprep.mubr.msk.bf16.mxu0 %vm525_vm0, %v524_v0  ;;  %v408_v3 = vld [vmem:[#allocation6 + $0x10] sm:$0xff]   ;;  %v415_v4 = vld [vmem:[#allocation8] sm:$0xff]   ;;  %v409_v5 = vld [vmem:[#allocation6 + $0x18] sm:$0xff]   ;;  %s526_s7 = smov [#allocation9]  }
  0x38   :  { %376 = vmatprep.subr.bf16.mxu1 %v524_v0  ;;  %392 = vmatprep.mubr.msk.bf16.mxu1 %vm525_vm0, %v524_v0  ;;  %v416_v6 = vld [vmem:[#allocation8 + $0x8] sm:$0xff]   ;;  %v410_v7 = vld [vmem:[#allocation6 + $0x20] sm:$0xff]   ;;  %v417_v8 = vld [vmem:[#allocation8 + $0x10] sm:$0xff]   ;;  %s306_s8 = sshll.u32 %s526_s7, 4  ;;  %s307_s8 = int_to_ptr.vmem [resolvable:$true] %s306_s8 }
  0x39   :  { %357 = vmatpush3.bf16.msra.mxu0 %v406_v1  ;;  %377 = vmatpush3.bf16.msra.mxu1 %v415_v4  ;;  %v411_v9 = vld [vmem:[#allocation6 + $0x28] sm:$0xff]   ;;  %v412_v10 = vld [vmem:[#allocation6 + $0x30] sm:$0xff]   ;;  %v413_v11 = vld [vmem:[#allocation6 + $0x38] sm:$0xff]   ;;  %p496_p11 = scmp.lt.s32.totalorder %s307_s8, %s307_s8 }
  0x3a   :  { %358 = vmatprep.subr.bf16.mxu0 %v524_v0  ;;  %378 = vmatprep.subr.bf16.mxu1 %v524_v0  ;;  %v414_v12 = vld [vmem:[#allocation3] sm:$0xff]   ;;  %v419_v14 = vld [vmem:[#allocation8 + $0x20] sm:$0xff]   ;;  %v420_v15 = vld [vmem:[#allocation8 + $0x28] sm:$0xff]  }
  0x3b   :  { %v418_v13 = vld [vmem:[#allocation8 + $0x18] sm:$0xff]   ;;  %v421_v16 = vld [vmem:[#allocation8 + $0x30] sm:$0xff]  }
  0x3c   :  { %v422_v17 = vld [vmem:[#allocation8 + $0x38] sm:$0xff]  }
  0x3d   :  { %359 = vmatpush3.bf16.msra.mxu0 %v407_v2  ;;  %379 = vmatpush3.bf16.msra.mxu1 %v416_v6  ;;  %v319_v18 = vld [vmem:[%s631_s2] ss:$0 sm:$0xff]  ;;  %s491_s2 = scalar_lea.vmem %s307_s8, 256 }
  0x3e   :  { %360 = vmatprep.subr.bf16.mxu0 %v524_v0  ;;  %380 = vmatprep.subr.bf16.mxu1 %v524_v0  ;;  %v329_v27 = vld [vmem:[%s633_s4] ss:$0 sm:$0xff]  ;;  %p492_p10 = scmp.ne.s32.totalorder %s307_s8, %s491_s2  ;;  %p497_p12 = scmp.lt.s32.totalorder %s491_s2, %s491_s2 }
  0x40   :  { %p498_p13 = por %p497_p12, %p496_p11 }
  0x41   :  { %361 = vmatpush3.bf16.msra.mxu0 %v408_v3  ;;  %381 = vmatpush3.bf16.msra.mxu1 %v417_v8 }
  0x42   :  { %362 = vmatprep.subr.bf16.mxu0 %v524_v0  ;;  %382 = vmatprep.subr.bf16.mxu1 %v524_v0  ;;  %p499_p0 = pnand %p498_p13, %p492_p10 }
  0x45   :  { %363 = vmatpush3.bf16.msra.mxu0 %v409_v5  ;;  %383 = vmatpush3.bf16.msra.mxu1 %v418_v13 }
  0x46   :  { %364 = vmatprep.subr.bf16.mxu0 %v524_v0  ;;  %384 = vmatprep.subr.bf16.mxu1 %v524_v0 }
  0x49   :  { %365 = vmatpush3.bf16.msra.mxu0 %v410_v7  ;;  %385 = vmatpush3.bf16.msra.mxu1 %v419_v14 }
  0x4a   :  { %366 = vmatprep.subr.bf16.mxu0 %v524_v0  ;;  %386 = vmatprep.subr.bf16.mxu1 %v524_v0 }
  0x4d   :  { %367 = vmatpush3.bf16.msra.mxu0 %v411_v9  ;;  %387 = vmatpush3.bf16.msra.mxu1 %v420_v15 }
  0x4e   :  { %368 = vmatprep.subr.bf16.mxu0 %v524_v0  ;;  %388 = vmatprep.subr.bf16.mxu1 %v524_v0 }
  0x51   :  { %369 = vmatpush3.bf16.msra.mxu0 %v412_v10  ;;  %389 = vmatpush3.bf16.msra.mxu1 %v421_v16 }
  0x52   :  { %370 = vmatprep.subr.bf16.mxu0 %v524_v0  ;;  %390 = vmatprep.subr.bf16.mxu1 %v524_v0 }
  0x55   :  { %371 = vmatpush3.bf16.msra.mxu0 %v413_v11  ;;  %391 = vmatpush3.bf16.msra.mxu1 %v422_v17 }
  0x58   :  { %373 = vmatmul.mubr.bf16.vlgmr.msra.gmra.mrb[0].mxu0 %v414_v12 }
 0x12b   :  { %v176_v19 = vpop.f32.mrb[0].mxu0 }
 0x12c   :  { %v374_v20 = vpop.f32.mrb[1].mxu0  ;;  %v177_v22 = vadd.f32 %v319_v18, %v176_v19 }
 0x12d   :  { %v179_v21 = vpop.f32.mrb[2].mxu0 }
 0x12e   :  { %v180_v23 = vadd.f32 %v319_v18, %v179_v21  ;;  %v375_v24 = vpop.f32.mrb[3].mxu0 }
 0x130   :  { %v183_v25 = vpack.c.bf16 %v180_v23, %v177_v22 }
 0x132   :  { %423 = vtanh.bf16 %v183_v25 }
 0x13d   :  { %v424_v26 = vpop.eup %423 }
 0x13e   :  { %393 = vmatmul.mubr.bf16.vlgmr.msra.gmra.mrb[0].mxu1 %v424_v26 }
 0x211   :  { %v292_v28 = vpop.f32.mrb[0].mxu1 }
 0x212   :  { %v293_v29 = vadd.f32 %v329_v27, %v292_v28  ;;  %v394_v30 = vpop.f32.mrb[1].mxu1 }
 0x213   :  { %v295_v31 = vpop.f32.mrb[2].mxu1 }
 0x214   :  { %299 = vst [vmem:[#allocation9] sm:$0xff] %v293_v29  ;;  %v296_v32 = vadd.f32 %v329_v27, %v295_v31  ;;  %v395_v33 = vpop.f32.mrb[3].mxu1 }
 0x216   :  { %300 = vst [vmem:[#allocation9 + $0x8] sm:$0xff] %v296_v32 }
 0x217   :  { %502 = shalt.err (!%p499_p0)
}
 0x218   :  { %s503_s10 = scalar_lea.hbm %s634_s5, 256 }
 0x219   :  { %p504_p1 = scmp.ne.s32.totalorder %s634_s5, %s503_s10  ;;  %p507_p2 = scmp.lt.u32.totalorder %s503_s10, %s634_s5 }
 0x21b   :  { %p509_p3 = pnand %p507_p2, %p504_p1 }
 0x21d   :  { %512 = shalt.err (!%p509_p3)
}
 0x21e   :  { %s527_s15 = smov 128   ;;  %s528_s16 = smov 8  }
 0x21f   :  { %312 = dma.vmem_to_hbm [thread:$0]  %s307_s8, 256, %s634_s5, [#allocation5], %s527_s15, %s527_s15, %s528_s16  }
 0x220   :  { %517 = dma.done.wait [#allocation5], 256  }
 0x221   :  { %518 = vsyncadd [#allocation5], 4294967040 }
 0x222   :  { %316 = vsyncpa [#allocation4], 1 }
 0x223   :  { %317 = vsyncpa [#allocation7], 1 }
 0x224   :  { %318 = vsyncpa [#allocation5], 1 }

</bundles_post_ra>
